<compile_context>
chip_gen: v7x
topology: tpu7x:2x2x1
jax: 0.10.0
libtpu: 0.0.40
codegen_flags: <defaults>
</compile_context>

<pallas_src>
import jax
import jax.numpy as jnp
from jax.experimental import pallas as pl
from jax.experimental.pallas import tpu as pltpu


def mlp_kernel(x_ref, w1_ref, b1_ref, w2_ref, b2_ref, o_ref):
    # x_ref : (10, TB)  activations, batch on the 128-lane axis
    # w1_ref: (5, 10) f32   b1_ref: (5, 1) f32
    # w2_ref: (2, 5)  f32   b2_ref: (2, 1) f32
    # o_ref : (2, TB)
    TB = x_ref.shape[1]
    x = x_ref[...].astype(jnp.float32)                 # upcast once (bf16 streaming path)

    # ----- layer 1: h = relu(W1 @ x + b1), 10 unrolled rank-1 VPU updates -----
    # TODO(synk): for v7x (VALU-bound once memory is fixed) use stride-0
    # sublane-broadcast loads (x_ref[pl.ds(k, 5, stride=0), :]) and fold 8
    # batch elems onto sublanes ((80, TB/8) blocks) to remove the 10->16 and
    # 2->8 sublane padding; requires the caller to provide that layout.
    w1 = w1_ref[...]                                   # (5, 10)
    acc1 = jnp.zeros((5, TB), jnp.float32)
    for k in range(10):                                # static unroll, VPU mul+add
        acc1 = acc1 + w1[:, k:k + 1] * x[k:k + 1, :]
    h = jnp.maximum(acc1 + b1_ref[...], 0.0)           # bias broadcast along lanes

    # ----- layer 2: y = W2 @ h + b2 (fused: h never round-trips HBM) -----
    w2 = w2_ref[...]                                   # (2, 5)
    acc2 = jnp.zeros((2, TB), jnp.float32)
    for k in range(5):
        acc2 = acc2 + w2[:, k:k + 1] * h[k:k + 1, :]
    o_ref[...] = (acc2 + b2_ref[...]).astype(o_ref.dtype)


def simple_model_forward_fm(xT, w1, b1, w2, b2, *, tb=65536):
    """Feature-major fast path: xT (10, B) -> (2, B). No wrapper relayout.

    tb: batch tile (lanes), multiple of 128. The default 65536 keeps the
    double-buffered working set (plus in-kernel intermediates) well inside
    every generation's VMEM; v6e can take tb=131072 (vmem_limit_bytes is
    derived from tb below). Keep tb <= 65536 on v7x (64 MiB physical per TC).
    """
    K, B = xT.shape
    assert K == 10, xT.shape
    assert tb % 128 == 0 and tb > 0, tb

    # Tile no larger than the lane-rounded batch; the boundary block is masked
    # by Pallas, so there is no materialized padding pass over the activations.
    TB = min(tb, ((B + 127) // 128) * 128)
    grid = (pl.cdiv(B, TB),)

    itemsize = jnp.dtype(xT.dtype).itemsize
    # Double-buffered, sublane-padded pipeline buffers + in-kernel f32
    # intermediates (x upcast, acc1, h, acc2), plus slack for weights/etc.
    x_buf = 16 * TB * itemsize                      # 10 rows pad to 16
    o_buf = 16 * TB * itemsize                      # 2 rows pad to 8 (f32) / 16 (bf16)
    inter = 48 * TB * 4                             # f32 intermediates inside the body
    vmem_limit = min(max(2 * (x_buf + o_buf) + inter + (2 << 20), 16 << 20), 64 << 20)

    w1c = w1.astype(jnp.float32)                    # (5, 10)
    w2c = w2.astype(jnp.float32)                    # (2, 5)
    b1c = b1.reshape(5, 1).astype(jnp.float32)
    b2c = b2.reshape(2, 1).astype(jnp.float32)

    return pl.pallas_call(
        mlp_kernel,
        out_shape=jax.ShapeDtypeStruct((2, B), xT.dtype),
        grid=grid,
        in_specs=[
            # TODO(synk): add pipeline_mode=pl.Buffered(3) here if xprof shows
            # exposed input DMA at large tb (there is VMEM headroom for it).
            pl.BlockSpec((10, TB), lambda i: (0, i)),   # streamed activations
            pl.BlockSpec((5, 10), lambda i: (0, 0)),    # resident weights/biases
            pl.BlockSpec((5, 1), lambda i: (0, 0)),
            pl.BlockSpec((2, 5), lambda i: (0, 0)),
            pl.BlockSpec((2, 1), lambda i: (0, 0)),
        ],
        out_specs=pl.BlockSpec((2, TB), lambda i: (0, i)),
        compiler_params=pltpu.CompilerParams(
            # TODO(synk): on v7x confirm both TensorCores are active; switch to
            # pltpu.CORE_PARALLEL / pl.core_map if the profile shows a single TC.
            dimension_semantics=("parallel",),
            vmem_limit_bytes=vmem_limit),
        cost_estimate=pl.CostEstimate(
            flops=B * (2 * (10 * 5 + 5 * 2) + 5),
            transcendentals=0,
            # Roughly honest: sublane-padded 10->16 read rows, 2->8 write rows.
            bytes_accessed=(16 + 8) * B * itemsize + 67 * 4),
    )(xT, w1c, b1c, w2c, b2c)


def simple_model_forward(x, w1, b1, w2, b2, *, tb=65536, stream_dtype=None):
    """PyTorch-layout wrapper: x (B, 10) -> (B, 2)  (== linear2(relu(linear1(x)))).

    Keeps exactly one fused transpose(+cast) pass on each side; prefer
    `simple_model_forward_fm` in feature-major pipelines to avoid them.
    Pass stream_dtype=jnp.bfloat16 to halve HBM bytes (f32 accumulate inside).
    """
    B, K = x.shape
    assert K == 10, x.shape
    xT = x.T if stream_dtype is None else x.T.astype(stream_dtype)
    out_t = simple_model_forward_fm(xT, w1, b1, w2, b2, tb=tb)
    return out_t.T.astype(x.dtype)


def init_params(key):
    """Deterministic init matching nn.Linear shapes (PyTorch layout)."""
    k1, k2, k3, k4 = jax.random.split(key, 4)
    bound1 = 1.0 / jnp.sqrt(10.0)
    w1 = jax.random.uniform(k1, (5, 10), jnp.float32, -bound1, bound1)
    b1 = jax.random.uniform(k2, (5,), jnp.float32, -bound1, bound1)
    bound2 = 1.0 / jnp.sqrt(5.0)
    w2 = jax.random.uniform(k3, (2, 5), jnp.float32, -bound2, bound2)
    b2 = jax.random.uniform(k4, (2,), jnp.float32, -bound2, bound2)
    return w1, b1, w2, b2


if __name__ == "__main__":
    key = jax.random.PRNGKey(0)
    kx, kp = jax.random.split(key)

    batch = 8
    x = jax.random.normal(kx, (batch, 10), jnp.float32)
    w1, b1, w2, b2 = init_params(kp)

    # Reference in plain JAX (same math as the PyTorch forward).
    ref = jnp.maximum(x @ w1.T + b1, 0.0) @ w2.T + b2

    # f32 streaming path — exact parity with the reference.
    out = jax.block_until_ready(simple_model_forward(x, w1, b1, w2, b2))
    assert out.shape == (batch, 2), out.shape
    assert jnp.allclose(out, ref, atol=1e-5, rtol=1e-5), "f32 path mismatch"

    # Feature-major fast path (no wrapper relayout passes).
    out_fm = jax.block_until_ready(simple_model_forward_fm(x.T, w1, b1, w2, b2))
    assert out_fm.shape == (2, batch), out_fm.shape
    assert jnp.allclose(out_fm.T, ref, atol=1e-5, rtol=1e-5), "fm path mismatch"

    # bf16 streaming path (half the HBM bytes) — loosened tolerance.
    out_bf = jax.block_until_ready(
        simple_model_forward(x, w1, b1, w2, b2, stream_dtype=jnp.bfloat16))
    assert jnp.allclose(out_bf, ref, atol=5e-2, rtol=5e-2), "bf16 path mismatch"

    print("KERNEL_OK")
</pallas_src>

<mosaic_0001>
module attributes {stable_mosaic.version = 11 : i64} {
  func.func @mlp_kernel(%arg0: i32, %arg1: memref<10x128xf32, #tpu.memory_space<vmem>>, %arg2: memref<5x10xf32, #tpu.memory_space<vmem>>, %arg3: memref<5x1xf32, #tpu.memory_space<vmem>>, %arg4: memref<2x5xf32, #tpu.memory_space<vmem>>, %arg5: memref<2x1xf32, #tpu.memory_space<vmem>>, %arg6: memref<2x128xf32, #tpu.memory_space<vmem>>) attributes {dimension_semantics = [#tpu.dimension_semantics<parallel>], iteration_bounds = array<i64: 1>, scalar_prefetch = 0 : i64, scratch_operands = 0 : i64, tpu.core_type = #tpu.core_type<tc>, window_params = [{transform_indices = @transform_0, window_bounds = array<i64: 10, 128>}, {pipeline_mode = #tpu.pipeline_mode<synchronous>, transform_indices = @transform_1, window_bounds = array<i64: 5, 10>}, {pipeline_mode = #tpu.pipeline_mode<synchronous>, transform_indices = @transform_2, window_bounds = array<i64: 5, 1>}, {pipeline_mode = #tpu.pipeline_mode<synchronous>, transform_indices = @transform_3, window_bounds = array<i64: 2, 5>}, {pipeline_mode = #tpu.pipeline_mode<synchronous>, transform_indices = @transform_4, window_bounds = array<i64: 2, 1>}, {transform_indices = @transform_5, window_bounds = array<i64: 2, 128>}]} {
    %c0 = arith.constant 0 : index
    %c0_0 = arith.constant 0 : index
    %0 = vector.load %arg1[%c0, %c0_0] : memref<10x128xf32, #tpu.memory_space<vmem>>, vector<10x128xf32>
    %c0_1 = arith.constant 0 : index
    %c0_2 = arith.constant 0 : index
    %1 = vector.load %arg2[%c0_1, %c0_2] : memref<5x10xf32, #tpu.memory_space<vmem>>, vector<5x10xf32>
    %cst = arith.constant 0.000000e+00 : f32
    %2 = vector.broadcast %cst : f32 to vector<5x128xf32>
    %3 = vector.extract_strided_slice %1 {offsets = [0, 0], sizes = [5, 1], strides = [1, 1]} : vector<5x10xf32> to vector<5x1xf32>
    %4 = vector.extract_strided_slice %0 {offsets = [0, 0], sizes = [1, 128], strides = [1, 1]} : vector<10x128xf32> to vector<1x128xf32>
    %5 = vector.broadcast %3 : vector<5x1xf32> to vector<5x128xf32>
    %6 = vector.broadcast %4 : vector<1x128xf32> to vector<5x128xf32>
    %7 = arith.mulf %5, %6 : vector<5x128xf32>
    %8 = arith.addf %2, %7 : vector<5x128xf32>
    %9 = vector.extract_strided_slice %1 {offsets = [0, 1], sizes = [5, 1], strides = [1, 1]} : vector<5x10xf32> to vector<5x1xf32>
    %10 = vector.extract_strided_slice %0 {offsets = [1, 0], sizes = [1, 128], strides = [1, 1]} : vector<10x128xf32> to vector<1x128xf32>
    %11 = vector.broadcast %9 : vector<5x1xf32> to vector<5x128xf32>
    %12 = vector.broadcast %10 : vector<1x128xf32> to vector<5x128xf32>
    %13 = arith.mulf %11, %12 : vector<5x128xf32>
    %14 = arith.addf %8, %13 : vector<5x128xf32>
    %15 = vector.extract_strided_slice %1 {offsets = [0, 2], sizes = [5, 1], strides = [1, 1]} : vector<5x10xf32> to vector<5x1xf32>
    %16 = vector.extract_strided_slice %0 {offsets = [2, 0], sizes = [1, 128], strides = [1, 1]} : vector<10x128xf32> to vector<1x128xf32>
    %17 = vector.broadcast %15 : vector<5x1xf32> to vector<5x128xf32>
    %18 = vector.broadcast %16 : vector<1x128xf32> to vector<5x128xf32>
    %19 = arith.mulf %17, %18 : vector<5x128xf32>
    %20 = arith.addf %14, %19 : vector<5x128xf32>
    %21 = vector.extract_strided_slice %1 {offsets = [0, 3], sizes = [5, 1], strides = [1, 1]} : vector<5x10xf32> to vector<5x1xf32>
    %22 = vector.extract_strided_slice %0 {offsets = [3, 0], sizes = [1, 128], strides = [1, 1]} : vector<10x128xf32> to vector<1x128xf32>
    %23 = vector.broadcast %21 : vector<5x1xf32> to vector<5x128xf32>
    %24 = vector.broadcast %22 : vector<1x128xf32> to vector<5x128xf32>
    %25 = arith.mulf %23, %24 : vector<5x128xf32>
    %26 = arith.addf %20, %25 : vector<5x128xf32>
    %27 = vector.extract_strided_slice %1 {offsets = [0, 4], sizes = [5, 1], strides = [1, 1]} : vector<5x10xf32> to vector<5x1xf32>
    %28 = vector.extract_strided_slice %0 {offsets = [4, 0], sizes = [1, 128], strides = [1, 1]} : vector<10x128xf32> to vector<1x128xf32>
    %29 = vector.broadcast %27 : vector<5x1xf32> to vector<5x128xf32>
    %30 = vector.broadcast %28 : vector<1x128xf32> to vector<5x128xf32>
    %31 = arith.mulf %29, %30 : vector<5x128xf32>
    %32 = arith.addf %26, %31 : vector<5x128xf32>
    %33 = vector.extract_strided_slice %1 {offsets = [0, 5], sizes = [5, 1], strides = [1, 1]} : vector<5x10xf32> to vector<5x1xf32>
    %34 = vector.extract_strided_slice %0 {offsets = [5, 0], sizes = [1, 128], strides = [1, 1]} : vector<10x128xf32> to vector<1x128xf32>
    %35 = vector.broadcast %33 : vector<5x1xf32> to vector<5x128xf32>
    %36 = vector.broadcast %34 : vector<1x128xf32> to vector<5x128xf32>
    %37 = arith.mulf %35, %36 : vector<5x128xf32>
    %38 = arith.addf %32, %37 : vector<5x128xf32>
    %39 = vector.extract_strided_slice %1 {offsets = [0, 6], sizes = [5, 1], strides = [1, 1]} : vector<5x10xf32> to vector<5x1xf32>
    %40 = vector.extract_strided_slice %0 {offsets = [6, 0], sizes = [1, 128], strides = [1, 1]} : vector<10x128xf32> to vector<1x128xf32>
    %41 = vector.broadcast %39 : vector<5x1xf32> to vector<5x128xf32>
    %42 = vector.broadcast %40 : vector<1x128xf32> to vector<5x128xf32>
    %43 = arith.mulf %41, %42 : vector<5x128xf32>
    %44 = arith.addf %38, %43 : vector<5x128xf32>
    %45 = vector.extract_strided_slice %1 {offsets = [0, 7], sizes = [5, 1], strides = [1, 1]} : vector<5x10xf32> to vector<5x1xf32>
    %46 = vector.extract_strided_slice %0 {offsets = [7, 0], sizes = [1, 128], strides = [1, 1]} : vector<10x128xf32> to vector<1x128xf32>
    %47 = vector.broadcast %45 : vector<5x1xf32> to vector<5x128xf32>
    %48 = vector.broadcast %46 : vector<1x128xf32> to vector<5x128xf32>
    %49 = arith.mulf %47, %48 : vector<5x128xf32>
    %50 = arith.addf %44, %49 : vector<5x128xf32>
    %51 = vector.extract_strided_slice %1 {offsets = [0, 8], sizes = [5, 1], strides = [1, 1]} : vector<5x10xf32> to vector<5x1xf32>
    %52 = vector.extract_strided_slice %0 {offsets = [8, 0], sizes = [1, 128], strides = [1, 1]} : vector<10x128xf32> to vector<1x128xf32>
    %53 = vector.broadcast %51 : vector<5x1xf32> to vector<5x128xf32>
    %54 = vector.broadcast %52 : vector<1x128xf32> to vector<5x128xf32>
    %55 = arith.mulf %53, %54 : vector<5x128xf32>
    %56 = arith.addf %50, %55 : vector<5x128xf32>
    %57 = vector.extract_strided_slice %1 {offsets = [0, 9], sizes = [5, 1], strides = [1, 1]} : vector<5x10xf32> to vector<5x1xf32>
    %58 = vector.extract_strided_slice %0 {offsets = [9, 0], sizes = [1, 128], strides = [1, 1]} : vector<10x128xf32> to vector<1x128xf32>
    %59 = vector.broadcast %57 : vector<5x1xf32> to vector<5x128xf32>
    %60 = vector.broadcast %58 : vector<1x128xf32> to vector<5x128xf32>
    %61 = arith.mulf %59, %60 : vector<5x128xf32>
    %62 = arith.addf %56, %61 : vector<5x128xf32>
    %c0_3 = arith.constant 0 : index
    %c0_4 = arith.constant 0 : index
    %63 = vector.load %arg3[%c0_3, %c0_4] : memref<5x1xf32, #tpu.memory_space<vmem>>, vector<5x1xf32>
    %64 = vector.broadcast %63 : vector<5x1xf32> to vector<5x128xf32>
    %65 = arith.addf %62, %64 : vector<5x128xf32>
    %cst_5 = arith.constant 0.000000e+00 : f32
    %66 = vector.broadcast %cst_5 : f32 to vector<5x128xf32>
    %67 = arith.maximumf %65, %66 : vector<5x128xf32>
    %c0_6 = arith.constant 0 : index
    %c0_7 = arith.constant 0 : index
    %68 = vector.load %arg4[%c0_6, %c0_7] : memref<2x5xf32, #tpu.memory_space<vmem>>, vector<2x5xf32>
    %cst_8 = arith.constant 0.000000e+00 : f32
    %69 = vector.broadcast %cst_8 : f32 to vector<2x128xf32>
    %70 = vector.extract_strided_slice %68 {offsets = [0, 0], sizes = [2, 1], strides = [1, 1]} : vector<2x5xf32> to vector<2x1xf32>
    %71 = vector.extract_strided_slice %67 {offsets = [0, 0], sizes = [1, 128], strides = [1, 1]} : vector<5x128xf32> to vector<1x128xf32>
    %72 = vector.broadcast %70 : vector<2x1xf32> to vector<2x128xf32>
    %73 = vector.broadcast %71 : vector<1x128xf32> to vector<2x128xf32>
    %74 = arith.mulf %72, %73 : vector<2x128xf32>
    %75 = arith.addf %69, %74 : vector<2x128xf32>
    %76 = vector.extract_strided_slice %68 {offsets = [0, 1], sizes = [2, 1], strides = [1, 1]} : vector<2x5xf32> to vector<2x1xf32>
    %77 = vector.extract_strided_slice %67 {offsets = [1, 0], sizes = [1, 128], strides = [1, 1]} : vector<5x128xf32> to vector<1x128xf32>
    %78 = vector.broadcast %76 : vector<2x1xf32> to vector<2x128xf32>
    %79 = vector.broadcast %77 : vector<1x128xf32> to vector<2x128xf32>
    %80 = arith.mulf %78, %79 : vector<2x128xf32>
    %81 = arith.addf %75, %80 : vector<2x128xf32>
    %82 = vector.extract_strided_slice %68 {offsets = [0, 2], sizes = [2, 1], strides = [1, 1]} : vector<2x5xf32> to vector<2x1xf32>
    %83 = vector.extract_strided_slice %67 {offsets = [2, 0], sizes = [1, 128], strides = [1, 1]} : vector<5x128xf32> to vector<1x128xf32>
    %84 = vector.broadcast %82 : vector<2x1xf32> to vector<2x128xf32>
    %85 = vector.broadcast %83 : vector<1x128xf32> to vector<2x128xf32>
    %86 = arith.mulf %84, %85 : vector<2x128xf32>
    %87 = arith.addf %81, %86 : vector<2x128xf32>
    %88 = vector.extract_strided_slice %68 {offsets = [0, 3], sizes = [2, 1], strides = [1, 1]} : vector<2x5xf32> to vector<2x1xf32>
    %89 = vector.extract_strided_slice %67 {offsets = [3, 0], sizes = [1, 128], strides = [1, 1]} : vector<5x128xf32> to vector<1x128xf32>
    %90 = vector.broadcast %88 : vector<2x1xf32> to vector<2x128xf32>
    %91 = vector.broadcast %89 : vector<1x128xf32> to vector<2x128xf32>
    %92 = arith.mulf %90, %91 : vector<2x128xf32>
    %93 = arith.addf %87, %92 : vector<2x128xf32>
    %94 = vector.extract_strided_slice %68 {offsets = [0, 4], sizes = [2, 1], strides = [1, 1]} : vector<2x5xf32> to vector<2x1xf32>
    %95 = vector.extract_strided_slice %67 {offsets = [4, 0], sizes = [1, 128], strides = [1, 1]} : vector<5x128xf32> to vector<1x128xf32>
    %96 = vector.broadcast %94 : vector<2x1xf32> to vector<2x128xf32>
    %97 = vector.broadcast %95 : vector<1x128xf32> to vector<2x128xf32>
    %98 = arith.mulf %96, %97 : vector<2x128xf32>
    %99 = arith.addf %93, %98 : vector<2x128xf32>
    %c0_9 = arith.constant 0 : index
    %c0_10 = arith.constant 0 : index
    %100 = vector.load %arg5[%c0_9, %c0_10] : memref<2x1xf32, #tpu.memory_space<vmem>>, vector<2x1xf32>
    %101 = vector.broadcast %100 : vector<2x1xf32> to vector<2x128xf32>
    %102 = arith.addf %99, %101 : vector<2x128xf32>
    %c0_11 = arith.constant 0 : index
    %c0_12 = arith.constant 0 : index
    %103 = vector.load %arg6[%c0_11, %c0_12] : memref<2x128xf32, #tpu.memory_space<vmem>>, vector<2x128xf32>
    tpu.vector_store %arg6[%c0_11, %c0_12], %102 {strides = array<i32>} : memref<2x128xf32, #tpu.memory_space<vmem>>, vector<2x128xf32>,
    return
  }
  func.func @transform_0(%arg0: i32) -> (i32, i32) {
    %c0_i32 = arith.constant 0 : i32
    %c0_i32_0 = arith.constant 0 : i32
    return %c0_i32, %arg0 : i32, i32
  }
  func.func @transform_1(%arg0: i32) -> (i32, i32) {
    %c0_i32 = arith.constant 0 : i32
    %c0_i32_0 = arith.constant 0 : i32
    %c0_i32_1 = arith.constant 0 : i32
    return %c0_i32, %c0_i32_0 : i32, i32
  }
  func.func @transform_2(%arg0: i32) -> (i32, i32) {
    %c0_i32 = arith.constant 0 : i32
    %c0_i32_0 = arith.constant 0 : i32
    %c0_i32_1 = arith.constant 0 : i32
    return %c0_i32, %c0_i32_0 : i32, i32
  }
  func.func @transform_3(%arg0: i32) -> (i32, i32) {
    %c0_i32 = arith.constant 0 : i32
    %c0_i32_0 = arith.constant 0 : i32
    %c0_i32_1 = arith.constant 0 : i32
    return %c0_i32, %c0_i32_0 : i32, i32
  }
  func.func @transform_4(%arg0: i32) -> (i32, i32) {
    %c0_i32 = arith.constant 0 : i32
    %c0_i32_0 = arith.constant 0 : i32
    %c0_i32_1 = arith.constant 0 : i32
    return %c0_i32, %c0_i32_0 : i32, i32
  }
  func.func @transform_5(%arg0: i32) -> (i32, i32) {
    %c0_i32 = arith.constant 0 : i32
    %c0_i32_0 = arith.constant 0 : i32
    return %c0_i32, %arg0 : i32, i32
  }
}

</mosaic_0001>

<bundles_post_ra>
// kernel: tpu_custom_call.1
= control target key start
LH: loop header
LB: loop body
LE: loop exit
PB: predicated region body
PF: predicated region fallthrough
CT: control target
= control target key end

     0   :  { %v260_v1 = vmov 2   ;;  %v261_v2 = vmov 0   ;;  %s341_s0 = inlined_call_operand.vmem [shape: f32[10,8], index: 0, kind: input, shape index: {}]   ;;  %s342_s1 = inlined_call_operand.vmem [shape: f32[5,10], index: 1, kind: input, shape index: {}]   ;;  %s343_s2 = inlined_call_operand.vmem [shape: f32[5,1], index: 2, kind: input, shape index: {}]   ;;  %s344_s3 = inlined_call_operand.vmem [shape: f32[2,5], index: 3, kind: input, shape index: {}]   ;;  %s345_s4 = inlined_call_operand.vmem [shape: f32[2,1], index: 4, kind: input, shape index: {}]   ;;  %s346_s5 = inlined_call_operand.hbm [shape: f32[2,8], index: 5, kind: output, shape index: {}]  }
   0x1   :  { %v23_v0 = vld [vmem:[%s342_s1] sm:$0x1f]  ;;  %220 = vset.pattern.permute.xlu1 %v260_v1  ;;  %218 = vset.pattern.permute.xlu0 %v261_v2 }
   0x2   :  { %46 = vperm.xlu1 %220, %v23_v0   ;;  %26 = vperm.xlu0 %218, %v23_v0  }
   0x3   :  { %10 = vsyncpa [#allocation3], 0  ;;  %v262_v3 = vmov 3   ;;  %v263_v4 = vmov 1   ;;  %v264_v5 = vmov 4   ;;  %v265_v6 = vmov 5  }
   0x4   :  { %v266_v7 = vmov 6   ;;  %v267_v8 = vmov 8   ;;  %v133_v9 = vld [vmem:[%s344_s3] sm:$0x3]  ;;  %v268_v10 = vmov 7   ;;  %v269_v11 = vmov 9  }
   0x5   :  { %v125_v12 = vld [vmem:[%s343_s2] sm:$0x1f]  ;;  %v29_v14 = vlaneseq  ;;  %v22_v48 = vld [vmem:[%s341_s0 + $0x8] sm:$0x3] }
   0x6   :  { %221 = vset.pattern.permute.xlu1 %v262_v3  ;;  %219 = vset.pattern.permute.xlu0 %v263_v4  ;;  %v185_v13 = vld [vmem:[%s345_s4] sm:$0x3] }
   0x7   :  { %56 = vperm.xlu1 %221, %v23_v0   ;;  %36 = vperm.xlu0 %219, %v23_v0   ;;  %v313_v15 = vshrl.u32 %v29_v14, 7  ;;  %v21_v18 = vld [vmem:[%s341_s0] sm:$0xff]  ;;  %s270_s0 = smov [#allocation2]  }
   0x8   :  { %s199_s26 = sshll.u32 %s270_s0, 4  ;;  %s200_s26 = int_to_ptr.vmem [resolvable:$true] %s199_s26 }
   0x9   :  { %v31_v16 = vsub.s32 0, %v313_v15  ;;  %v41_v17 = vsub.s32 1, %v313_v15  ;;  %v51_v19 = vsub.s32 2, %v313_v15  ;;  %v61_v23 = vsub.s32 3, %v313_v15  ;;  %s236_s27 = scalar_lea.vmem %s200_s26, 32  ;;  %p241_p1 = scmp.lt.s32.totalorder %s200_s26, %s200_s26 }
   0xa   :  { %v71_v25 = vsub.s32 4, %v313_v15  ;;  %v81_v30 = vsub.s32 5, %v313_v15  ;;  %v91_v37 = vsub.s32 6, %v313_v15  ;;  %v101_v46 = vsub.s32 7, %v313_v15  ;;  %p237_p0 = scmp.ne.s32.totalorder %s200_s26, %s236_s27  ;;  %p242_p2 = scmp.lt.s32.totalorder %s236_s27, %s236_s27 }
   0xb   :  { %222 = vset.pattern.permute.xlu1 %v264_v5  ;;  %223 = vset.pattern.permute.xlu0 %v265_v6  ;;  %v32_v22 = vrot.slane %v21_v18, %v31_v16  ;;  %v42_v24 = vrot.slane %v21_v18, %v41_v17  ;;  %v52_v26 = vrot.slane %v21_v18, %v51_v19 }
   0xc   :  { %66 = vperm.xlu1 %222, %v23_v0   ;;  %76 = vperm.xlu0 %223, %v23_v0   ;;  %v62_v31 = vrot.slane %v21_v18, %v61_v23  ;;  %v72_v33 = vrot.slane %v21_v18, %v71_v25  ;;  %v82_v36 = vrot.slane %v21_v18, %v81_v30  ;;  %p243_p3 = por %p242_p2, %p241_p1 }
   0xd   :  { %v92_v45 = vrot.slane %v21_v18, %v91_v37  ;;  %v102_v52 = vrot.slane %v21_v18, %v101_v46  ;;  %v112_v53 = vrot.slane %v22_v48, %v31_v16  ;;  %v122_v59 = vrot.slane %v22_v48, %v41_v17 }
   0xe   :  { %p244_p4 = pnand %p243_p3, %p237_p0 }
  0x10   :  { %224 = vset.pattern.permute.xlu1 %v266_v7  ;;  %226 = vset.pattern.permute.xlu0 %v267_v8 }
  0x11   :  { %86 = vperm.xlu1 %224, %v23_v0   ;;  %106 = vperm.xlu0 %226, %v23_v0  }
  0x15   :  { %225 = vset.pattern.permute.xlu1 %v268_v10  ;;  %229 = vset.pattern.permute.xlu0 %v261_v2 }
  0x16   :  { %96 = vperm.xlu1 %225, %v23_v0   ;;  %136 = vperm.xlu0 %229, %v133_v9  }
  0x1a   :  { %227 = vset.pattern.permute.xlu1 %v269_v11  ;;  %232 = vset.pattern.permute.xlu0 %v262_v3 }
  0x1b   :  { %116 = vperm.xlu1 %227, %v23_v0   ;;  %166 = vperm.xlu0 %232, %v133_v9  }
  0x1f   :  { %228 = vset.pattern.permute.xlu1 %v261_v2  ;;  %235 = vset.pattern.permute.xlu0 %v261_v2 }
  0x20   :  { %128 = vperm.xlu1 %228, %v125_v12  }
  0x24   :  { %230 = vset.pattern.permute.xlu1 %v263_v4 }
  0x25   :  { %146 = vperm.xlu1 %230, %v133_v9  }
  0x29   :  { %231 = vset.pattern.permute.xlu1 %v260_v1 }
  0x2a   :  { %156 = vperm.xlu1 %231, %v133_v9  }
  0x2e   :  { %233 = vset.pattern.permute.xlu1 %v264_v5 }
  0x2f   :  { %176 = vperm.xlu1 %233, %v133_v9  }
  0x33   :  { %234 = vset.pattern.permute.xlu1 %v261_v2 }
  0x34   :  { %188 = vperm.xlu1 %234, %v185_v13  }
  0x81   :  { %v47_v20 = vpop.permute.xlu1 %46  ;;  %v27_v21 = vpop.permute.xlu0 %26 }
  0x82   :  { %v33_v27 = vmul.f32 %v32_v22, %v27_v21  ;;  %v53_v34 = vmul.f32 %v52_v26, %v47_v20 }
  0x86   :  { %v57_v28 = vpop.permute.xlu1 %56  ;;  %v37_v29 = vpop.permute.xlu0 %36 }
  0x87   :  { %v43_v32 = vmul.f32 %v42_v24, %v37_v29  ;;  %v63_v38 = vmul.f32 %v62_v31, %v57_v28 }
  0x89   :  { %v44_v35 = vadd.f32 %v43_v32, %v33_v27 }
  0x8b   :  { %v54_v39 = vadd.f32 %v53_v34, %v44_v35  ;;  %v67_v40 = vpop.permute.xlu1 %66  ;;  %v77_v41 = vpop.permute.xlu0 %76 }
  0x8c   :  { %v73_v42 = vmul.f32 %v72_v33, %v67_v40  ;;  %v83_v44 = vmul.f32 %v82_v36, %v77_v41 }
  0x8d   :  { %v64_v43 = vadd.f32 %v63_v38, %v54_v39 }
  0x8f   :  { %v74_v47 = vadd.f32 %v73_v42, %v64_v43 }
  0x90   :  { %v87_v49 = vpop.permute.xlu1 %86  ;;  %v107_v54 = vpop.permute.xlu0 %106 }
  0x91   :  { %v84_v50 = vadd.f32 %v83_v44, %v74_v47  ;;  %v93_v51 = vmul.f32 %v92_v45, %v87_v49  ;;  %v113_v58 = vmul.f32 %v112_v53, %v107_v54 }
  0x93   :  { %v94_v56 = vadd.f32 %v93_v51, %v84_v50 }
  0x95   :  { %v97_v55 = vpop.permute.xlu1 %96  ;;  %v137_v4 = vpop.permute.xlu0 %136 }
  0x96   :  { %v103_v57 = vmul.f32 %v102_v52, %v97_v55 }
  0x98   :  { %v104_v60 = vadd.f32 %v103_v57, %v94_v56 }
  0x9a   :  { %v114_v61 = vadd.f32 %v113_v58, %v104_v60  ;;  %v117_v62 = vpop.permute.xlu1 %116  ;;  %v167_v12 = vpop.permute.xlu0 %166 }
  0x9b   :  { %v123_v63 = vmul.f32 %v122_v59, %v117_v62 }
  0x9d   :  { %v124_v0 = vadd.f32 %v123_v63, %v114_v61 }
  0x9f   :  { %v129_v1 = vpop.permute.xlu1 %128 }
  0xa0   :  { %v131_v2 = vadd.f32 %v129_v1, %v124_v0 }
  0xa2   :  { %v132_v3 = vmax.f32 %v131_v2, 0.0 }
  0xa4   :  { %v142_v5 = vrot.slane %v132_v3, %v31_v16  ;;  %v147_v6 = vpop.permute.xlu1 %146  ;;  %v152_v7 = vrot.slane %v132_v3, %v41_v17  ;;  %v172_v10 = vrot.slane %v132_v3, %v61_v23  ;;  %v162_v11 = vrot.slane %v132_v3, %v51_v19 }
  0xa5   :  { %v182_v21 = vrot.slane %v132_v3, %v71_v25 }
  0xa6   :  { %v143_v8 = vmul.f32 %v142_v5, %v137_v4  ;;  %v153_v9 = vmul.f32 %v152_v7, %v147_v6  ;;  %v173_v18 = vmul.f32 %v172_v10, %v167_v12 }
  0xa8   :  { %v154_v14 = vadd.f32 %v153_v9, %v143_v8 }
  0xa9   :  { %v157_v13 = vpop.permute.xlu1 %156 }
  0xaa   :  { %v163_v15 = vmul.f32 %v162_v11, %v157_v13 }
  0xac   :  { %v164_v20 = vadd.f32 %v163_v15, %v154_v14 }
  0xae   :  { %v177_v22 = vpop.permute.xlu1 %176  ;;  %v174_v24 = vadd.f32 %v173_v18, %v164_v20 }
  0xaf   :  { %v183_v26 = vmul.f32 %v182_v21, %v177_v22 }
  0xb1   :  { %v184_v27 = vadd.f32 %v183_v26, %v174_v24 }
  0xb3   :  { %v189_v16 = vpop.permute.xlu1 %188 }
  0xb4   :  { %v191_v28 = vadd.f32 %v189_v16, %v184_v27 }
  0xb6   :  { %192 = vst [vmem:[#allocation2] sm:$0x3] %v191_v28 }
  0xb7   :  { %247 = shalt.err (!%p244_p4)
}
  0xb8   :  { %s248_s30 = scalar_lea.hbm %s346_s5, 32 }
  0xb9   :  { %p249_p5 = scmp.ne.s32.totalorder %s346_s5, %s248_s30  ;;  %p252_p6 = scmp.lt.u32.totalorder %s248_s30, %s346_s5 }
  0xbb   :  { %p254_p7 = pnand %p252_p6, %p249_p5 }
  0xbd   :  { %257 = shalt.err (!%p254_p7)
}
  0xbe   :  { %202 = dma.vmem_to_hbm [thread:$0]  %s200_s26, 32, %s346_s5, [#allocation3]  }
  0xbf   :  { %258 = dma.done.wait [#allocation3], 32  }
  0xc0   :  { %259 = vsyncadd [#allocation3], 4294967264 }
  0xc1   :  { %206 = vsyncpa [#allocation3], 1 }

</bundles_post_ra>
